<compile_context>
chip_gen: v6e
topology: v6e:2x2x1
jax: 0.10.0
libtpu: 0.0.40
codegen_flags: <defaults>
</compile_context>

<pallas_src>
import jax
import jax.numpy as jnp
from jax import lax
from jax.experimental import pallas as pl
from jax.experimental.pallas import tpu as pltpu

EMBED_DIM = 64
EMBED_PAD = 128            # embedding padded to full lane width (zeros past 64)
FEAT_CH = 128              # ConvKernelExtractor out_channels
SE_RED = 16                # SE reduction -> hidden = 128 // 16 = 8
KW = 5                     # fused conv window (k=3 branch zero-padded to 5 taps)
PAD = 2                    # 'same' padding for the 5-tap window


def _round_up(x, m):
    return ((x + m - 1) // m) * m


def _vmem_capacity_bytes():
    """Per-core VMEM capacity; conservative fallback (v7x-sized) if unknown."""
    try:
        cap = int(pltpu.get_tpu_info().vmem_capacity_bytes)
        if cap > 0:
            return cap
    except Exception:
        pass
    return 64 * 1024 * 1024


def _pick_tiles(n, L, kpad):
    """Generation-aware (tile_n, tile_l): big tiles on v5e/v6e (128 MiB VMEM,
    single TC), bounded tiles on v7x (64 MiB, 2 TCs)."""
    cap = _vmem_capacity_bytes()
    budget = max(2 << 20, cap // 8)                 # per-step working-set budget
    # double-buffered bf16 patch tile + in-kernel f32 feat intermediate:
    per_nl = 2 * 2 * kpad + 4 * FEAT_CH
    max_nl = max(64, budget // per_nl)

    tile_l = min(_round_up(L, 8), 512)
    if tile_l >= 16:
        tile_l = _round_up(tile_l, 16)              # clean bf16 sublane packing
    while tile_l > 8 and tile_l * 8 > max_nl:
        tile_l = max(8, ((tile_l // 2) + 7) // 8 * 8)

    tile_n = max(8, min(1024, (max_nl // tile_l) // 8 * 8))
    n8 = _round_up(n, 8)
    if n8 > 8:                                      # keep >=2 batch steps (v7x megacore)
        tile_n = min(tile_n, _round_up(-(-n8 // 2), 8))
    tile_n = min(tile_n, n8)
    return tile_n, tile_l


# ----------------------------------------------------------------------------
# Kernel 1: fused conv (lane-dense im2col matmul) -> bias+ReLU -> GAP(accum)
#           -> SE -> projection (epilogue on last L step)
# ----------------------------------------------------------------------------
def _make_feature_kernel(l_true, need_mask):
    inv_l = float(1.0 / l_true)

    def kernel(patch_ref, wconv_ref, bconv_ref, wse1_ref, bse1_ref,
               wse2_ref, bse2_ref, wproj_ref, bproj_ref, out_ref, acc_ref):
        li = pl.program_id(1)

        @pl.when(li == 0)
        def _():
            acc_ref[...] = jnp.zeros_like(acc_ref)

        tn, tl, kp = patch_ref.shape
        # Lane-dense bf16 im2col tile -> ONE MXU matmul, 128-multiple contraction.
        p = patch_ref[...].reshape(tn * tl, kp)
        feat = jnp.dot(p, wconv_ref[...], preferred_element_type=jnp.float32)
        feat = jnp.maximum(feat + bconv_ref[...], 0.0)          # bias + ReLU
        feat = feat.reshape(tn, tl, FEAT_CH)
        if need_mask:   # static branch: zero contributions of L-padding rows
            row = li * tl + lax.broadcasted_iota(jnp.int32, (tl, FEAT_CH), 0)
            feat = jnp.where((row < l_true)[None], feat, 0.0)
        acc_ref[...] += jnp.sum(feat, axis=1)                   # GAP accumulation

        @pl.when(li == pl.num_programs(1) - 1)
        def _():
            s = acc_ref[...] * inv_l                            # (tn, 128) GAP
            # SE block; hidden dim zero-padded 8 -> 128 (exact: ReLU(0+0)=0 and
            # the padded rows of w_se2 are zero), so every matmul is lane-dense.
            z = jnp.dot(s.astype(jnp.bfloat16), wse1_ref[...],
                        preferred_element_type=jnp.float32) + bse1_ref[...]
            z = jnp.maximum(z, 0.0)
            e = jax.nn.sigmoid(jnp.dot(z.astype(jnp.bfloat16), wse2_ref[...],
                                       preferred_element_type=jnp.float32)
                               + bse2_ref[...])                 # (tn, 128)
            # mean_L(feat * e) == mean_L(feat) * e -> no second pass over L.
            pooled = s * e
            emb = jnp.dot(pooled.astype(jnp.bfloat16), wproj_ref[...],
                          preferred_element_type=jnp.float32) + bproj_ref[...]
            out_ref[...] = emb                                  # lanes 64..127 stay 0

    return kernel


def extract_features(x_ncl, kp, *, tile_n=None, tile_l=None):
    """x_ncl: (N, Cin, L) f32 -> embeddings (N, EMBED_PAD) f32 (lanes 64.. == 0)."""
    n, cin, L = x_ncl.shape
    kc = KW * cin
    kpad = kp['w_conv'].shape[0]                    # KW*Cin rounded up to 128
    auto_n, auto_l = _pick_tiles(n, L, kpad)
    tile_n = tile_n or auto_n
    tile_l = tile_l or auto_l
    n_pad = _round_up(n, tile_n)
    l_pad = _round_up(L, tile_l)

    # Wrapper-side im2col: cast to bf16 ONCE (before the 5x patch expansion),
    # then build the patch block whose lane axis is KW*Cin zero-padded to a
    # multiple of 128.  The conv halo lives inside the patch columns, so the
    # kernel never pads/slices/concats and L tiles need no overlap handling.
    xb = x_ncl.astype(jnp.bfloat16)                               # (N, Cin, L)
    xp = jnp.pad(xb, ((0, 0), (0, 0), (PAD, PAD)))                # (N, Cin, L+4)
    taps = jnp.stack([xp[:, :, k:k + L] for k in range(KW)], axis=1)
    patches = jnp.transpose(taps, (0, 3, 1, 2)).reshape(n, L, kc)  # (N, L, KW*Cin)
    patches = jnp.pad(patches,
                      ((0, n_pad - n), (0, l_pad - L), (0, kpad - kc)))

    cap = _vmem_capacity_bytes()
    vmem_limit = int(min(cap, 128 * 1024 * 1024) * 3) // 4  # ~96MiB v5e/v6e, ~48MiB v7x

    weights = (kp['w_conv'], kp['b_conv'], kp['w_se1'], kp['b_se1'],
               kp['w_se2'], kp['b_se2'], kp['w_proj'], kp['b_proj'])

    def full(a):
        nd = a.ndim
        return pl.BlockSpec(a.shape, lambda i, l, nd=nd: (0,) * nd)

    kernel = _make_feature_kernel(L, l_pad != L)
    emb = pl.pallas_call(
        kernel,
        out_shape=jax.ShapeDtypeStruct((n_pad, EMBED_PAD), jnp.float32),
        grid=(n_pad // tile_n, l_pad // tile_l),        # reduction (L) axis last
        in_specs=[pl.BlockSpec((tile_n, tile_l, kpad), lambda i, l: (i, l, 0))]
                 + [full(w) for w in weights],
        out_specs=pl.BlockSpec((tile_n, EMBED_PAD), lambda i, l: (i, 0)),
        scratch_shapes=[pltpu.VMEM((tile_n, FEAT_CH), jnp.float32)],
        compiler_params=pltpu.CompilerParams(
            dimension_semantics=("parallel", "arbitrary"),
            vmem_limit_bytes=vmem_limit),
    )(patches, *weights)
    return emb[:n]


# ----------------------------------------------------------------------------
# Kernel 2: prototypes, squared-Euclidean distances (128-lane MXU), softmax
# ----------------------------------------------------------------------------
def _proto_dist_kernel(sup_ref, qry_ref, dist_ref, prob_ref):
    proto = jnp.mean(sup_ref[...], axis=1)                    # (K, 128)
    q = qry_ref[...]                                          # (TQ, 128)

    qn = jnp.sum(q * q, axis=-1, keepdims=True)               # (TQ, 1)
    pn = jnp.sum(proto * proto, axis=-1, keepdims=True)       # (K, 1)
    # Embedding lanes EMBED_DIM..127 are exactly zero, so the augmented
    # "+1" / "||p||^2" column lives in lane EMBED_DIM of the existing 128-wide
    # buffers -- no 129-lane concat, one clean 128-lane MXU contraction.
    onehot = (lax.broadcasted_iota(jnp.int32, (1, EMBED_PAD), 1)
              == EMBED_DIM).astype(jnp.float32)               # (1, 128)
    q_aug = q * (-2.0) + onehot                                # (TQ, 128)
    p_aug = proto + pn * onehot                                # (K, 128)
    cross = lax.dot_general(q_aug, p_aug, (((1,), (1,)), ((), ())),
                            preferred_element_type=jnp.float32)   # (TQ, K)
    dist = jnp.maximum(qn + cross, 0.0)
    dist_ref[...] = dist

    neg = -dist                                               # softmax(-distances)
    m = jnp.max(neg, axis=-1, keepdims=True)
    ex = jnp.exp(neg - m)
    denom = jnp.sum(ex, axis=-1, keepdims=True)
    prob_ref[...] = ex * pl.reciprocal(denom, approx=True)


def proto_distances(sup_emb, qry_emb, *, tile_q=None):
    K, S, D = sup_emb.shape
    Q = qry_emb.shape[0]
    if tile_q is None:
        tile_q = min(256, _round_up(Q, 8))
    q_pad = _round_up(Q, tile_q)
    if q_pad != Q:
        qry_emb = jnp.pad(qry_emb, ((0, q_pad - Q), (0, 0)))

    dist, prob = pl.pallas_call(
        _proto_dist_kernel,
        out_shape=(jax.ShapeDtypeStruct((q_pad, K), jnp.float32),
                   jax.ShapeDtypeStruct((q_pad, K), jnp.float32)),
        grid=(q_pad // tile_q,),
        in_specs=[pl.BlockSpec((K, S, D), lambda i: (0, 0, 0)),
                  pl.BlockSpec((tile_q, D), lambda i: (i, 0))],
        out_specs=(pl.BlockSpec((tile_q, K), lambda i: (i, 0)),
                   pl.BlockSpec((tile_q, K), lambda i: (i, 0))),
        compiler_params=pltpu.CompilerParams(
            dimension_semantics=("parallel",)),
    )(sup_emb, qry_emb)
    return dist[:Q], prob[:Q]


# ----------------------------------------------------------------------------
# Parameters (PyTorch-conventional shapes) + kernel-ready packing + forward
# ----------------------------------------------------------------------------
def init_params(in_channels, key):
    ks = jax.random.split(key, 10)

    def nrm(k, shape, scale=0.1):
        return (scale * jax.random.normal(k, shape)).astype(jnp.float32)

    co = FEAT_CH // 2          # 64 channels per conv branch
    hid = FEAT_CH // SE_RED    # 8
    return dict(
        w3=nrm(ks[0], (co, in_channels, 3)),      # Conv1d k=3 (Co, Cin, K)
        b3=nrm(ks[1], (co,)),
        w5=nrm(ks[2], (co, in_channels, 5)),      # Conv1d k=5
        b5=nrm(ks[3], (co,)),
        w_se1=nrm(ks[4], (hid, FEAT_CH)),         # SE squeeze Linear (out, in)
        b_se1=nrm(ks[5], (hid,)),
        w_se2=nrm(ks[6], (FEAT_CH, hid)),         # SE excite Linear
        b_se2=nrm(ks[7], (FEAT_CH,)),
        w_proj=nrm(ks[8], (EMBED_DIM, FEAT_CH)),  # embedding Linear
        b_proj=nrm(ks[9], (EMBED_DIM,)),
    )


def prepare_params(p):
    """Pack weights into fused / lane-dense / bf16 layouts the kernels use."""
    cin = p['w3'].shape[1]
    kc = KW * cin
    kpad = _round_up(kc, 128)

    # Fuse both conv branches into one 5-tap weight (k=3 centered in the window).
    w3f = jnp.pad(p['w3'], ((0, 0), (0, 0), (1, 1)))              # (64, Cin, 5)
    wc = jnp.concatenate([w3f, p['w5']], axis=0)                  # (128, Cin, 5)
    # im2col weight: row index = k*Cin + c, zero-padded to kpad rows.
    w_conv = jnp.transpose(wc, (2, 1, 0)).reshape(kc, FEAT_CH)
    w_conv = jnp.pad(w_conv, ((0, kpad - kc), (0, 0)))            # (kpad, 128)
    b_conv = jnp.concatenate([p['b3'], p['b5']])[None, :]         # (1, 128)

    hid = p['w_se1'].shape[0]                                     # 8
    w_se1 = jnp.pad(p['w_se1'].T, ((0, 0), (0, FEAT_CH - hid)))   # (128, 128)
    b_se1 = jnp.pad(p['b_se1'], (0, FEAT_CH - hid))[None, :]      # (1, 128)
    w_se2 = jnp.pad(p['w_se2'].T, ((0, FEAT_CH - hid), (0, 0)))   # (128, 128)
    b_se2 = p['b_se2'][None, :]

    w_proj = jnp.pad(p['w_proj'].T, ((0, 0), (0, EMBED_PAD - EMBED_DIM)))
    b_proj = jnp.pad(p['b_proj'], (0, EMBED_PAD - EMBED_DIM))[None, :]

    bf = lambda a: a.astype(jnp.bfloat16)
    return dict(
        w_conv=bf(w_conv), b_conv=b_conv,
        w_se1=bf(w_se1), b_se1=b_se1,
        w_se2=bf(w_se2), b_se2=b_se2,
        w_proj=bf(w_proj), b_proj=b_proj,
    )


def dssmls_forward(params, support_set, query_set, unlabeled_set):
    # support_set: (K, S, Cin, L); query_set: (Q, Cin, L); unlabeled_set: (U, Cin, L)
    # TODO(synk): DynamicPseudoLabeling's refined prototypes are computed but never
    # used in the reference forward's returned values, so that branch is skipped.
    K, S, Cin, L = support_set.shape
    kp = prepare_params(params)
    batch = jnp.concatenate([support_set.reshape(K * S, Cin, L), query_set], axis=0)
    emb = extract_features(batch, kp)                 # (K*S+Q, 128), lanes 64.. are 0
    sup_emb = emb[:K * S].reshape(K, S, EMBED_PAD)
    qry_emb = emb[K * S:]
    distances, probabilities = proto_distances(sup_emb, qry_emb)
    return distances, probabilities


if __name__ == "__main__":
    key = jax.random.PRNGKey(0)
    k_params, k_sup, k_qry, k_unl = jax.random.split(key, 4)

    in_channels, L = 4, 16
    K, S, Q, U = 3, 4, 6, 5          # classes, shots, queries, unlabeled

    params = init_params(in_channels, k_params)
    support = jax.random.normal(k_sup, (K, S, in_channels, L), jnp.float32)
    query = jax.random.normal(k_qry, (Q, in_channels, L), jnp.float32)
    unlabeled = jax.random.normal(k_unl, (U, in_channels, L), jnp.float32)

    dist, prob = jax.jit(dssmls_forward)(params, support, query, unlabeled)
    jax.block_until_ready((dist, prob))

    assert dist.shape == (Q, K) and prob.shape == (Q, K)
    assert bool(jnp.all(jnp.isfinite(dist))) and bool(jnp.all(jnp.isfinite(prob)))
    print("KERNEL_OK")
</pallas_src>

<mosaic_0001>
module attributes {stable_mosaic.version = 11 : i64} {
  func.func @_proto_dist_kernel(%arg0: i32, %arg1: memref<3x4x128xf32, #tpu.memory_space<vmem>>, %arg2: memref<8x128xf32, #tpu.memory_space<vmem>>, %arg3: memref<8x3xf32, #tpu.memory_space<vmem>>, %arg4: memref<8x3xf32, #tpu.memory_space<vmem>>) attributes {dimension_semantics = [#tpu.dimension_semantics<parallel>], iteration_bounds = array<i64: 1>, scalar_prefetch = 0 : i64, scratch_operands = 0 : i64, tpu.core_type = #tpu.core_type<tc>, window_params = [{pipeline_mode = #tpu.pipeline_mode<synchronous>, transform_indices = @transform_0, window_bounds = array<i64: 3, 4, 128>}, {transform_indices = @transform_1, window_bounds = array<i64: 8, 128>}, {transform_indices = @transform_2, window_bounds = array<i64: 8, 3>}, {transform_indices = @transform_3, window_bounds = array<i64: 8, 3>}]} {
    %c0 = arith.constant 0 : index
    %c0_0 = arith.constant 0 : index
    %c0_1 = arith.constant 0 : index
    %0 = vector.load %arg1[%c0, %c0_0, %c0_1] : memref<3x4x128xf32, #tpu.memory_space<vmem>>, vector<3x4x128xf32>
    %cst = arith.constant dense<0.000000e+00> : vector<3x128xf32>
    %1 = vector.multi_reduction <add>, %0, %cst [1] : vector<3x4x128xf32> to vector<3x128xf32>
    %cst_2 = arith.constant 4.000000e+00 : f32
    %2 = vector.broadcast %cst_2 : f32 to vector<3x128xf32>
    %3 = arith.divf %1, %2 : vector<3x128xf32>
    %c0_3 = arith.constant 0 : index
    %c0_4 = arith.constant 0 : index
    %4 = vector.load %arg2[%c0_3, %c0_4] : memref<8x128xf32, #tpu.memory_space<vmem>>, vector<8x128xf32>
    %5 = arith.mulf %4, %4 : vector<8x128xf32>
    %cst_5 = arith.constant dense<0.000000e+00> : vector<8xf32>
    %6 = vector.multi_reduction <add>, %5, %cst_5 [1] : vector<8x128xf32> to vector<8xf32>
    %7 = vector.shape_cast %6 : vector<8xf32> to vector<8x1xf32>
    %8 = arith.mulf %3, %3 : vector<3x128xf32>
    %cst_6 = arith.constant dense<0.000000e+00> : vector<3xf32>
    %9 = vector.multi_reduction <add>, %8, %cst_6 [1] : vector<3x128xf32> to vector<3xf32>
    %10 = vector.shape_cast %9 : vector<3xf32> to vector<3x1xf32>
    %11 = tpu.iota {dimensions = array<i32: 1>} : vector<1x128xi32>
    %c64_i32 = arith.constant 64 : i32
    %12 = vector.broadcast %c64_i32 : i32 to vector<1x128xi32>
    %13 = arith.cmpi eq, %11, %12 : vector<1x128xi32>
    %14 = arith.extui %13 : vector<1x128xi1> to vector<1x128xi32>
    %15 = arith.sitofp %14 : vector<1x128xi32> to vector<1x128xf32>
    %cst_7 = arith.constant -2.000000e+00 : f32
    %16 = vector.broadcast %cst_7 : f32 to vector<8x128xf32>
    %17 = arith.mulf %4, %16 : vector<8x128xf32>
    %18 = vector.broadcast %15 : vector<1x128xf32> to vector<8x128xf32>
    %19 = arith.addf %17, %18 : vector<8x128xf32>
    %20 = vector.broadcast %10 : vector<3x1xf32> to vector<3x128xf32>
    %21 = vector.broadcast %15 : vector<1x128xf32> to vector<3x128xf32>
    %22 = arith.mulf %20, %21 : vector<3x128xf32>
    %23 = arith.addf %3, %22 : vector<3x128xf32>
    %cst_8 = arith.constant dense<0.000000e+00> : vector<8x3xf32>
    %24 = tpu.matmul %19, %23, %cst_8 {dimension_numbers = #tpu.dot_dimension_numbers<[1], [1], [0], [0], [0, 0, 1, 0], [], []>} : vector<8x128xf32>, vector<3x128xf32>, vector<8x3xf32> -> vector<8x3xf32>
    %25 = vector.broadcast %7 : vector<8x1xf32> to vector<8x3xf32>
    %26 = arith.addf %25, %24 : vector<8x3xf32>
    %cst_9 = arith.constant 0.000000e+00 : f32
    %27 = vector.broadcast %cst_9 : f32 to vector<8x3xf32>
    %28 = arith.maximumf %26, %27 : vector<8x3xf32>
    %c0_10 = arith.constant 0 : index
    %c0_11 = arith.constant 0 : index
    %29 = vector.load %arg3[%c0_10, %c0_11] : memref<8x3xf32, #tpu.memory_space<vmem>>, vector<8x3xf32>
    tpu.vector_store %arg3[%c0_10, %c0_11], %28 {strides = array<i32>} : memref<8x3xf32, #tpu.memory_space<vmem>>, vector<8x3xf32>,
    %cst_12 = arith.constant 0.000000e+00 : f32
    %30 = vector.broadcast %cst_12 : f32 to vector<8x3xf32>
    %31 = arith.subf %30, %28 : vector<8x3xf32>
    %cst_13 = arith.constant dense<0xFF800000> : vector<8xf32>
    %32 = vector.multi_reduction <maximumf>, %31, %cst_13 [1] : vector<8x3xf32> to vector<8xf32>
    %33 = vector.shape_cast %32 : vector<8xf32> to vector<8x1xf32>
    %34 = vector.broadcast %33 : vector<8x1xf32> to vector<8x3xf32>
    %35 = arith.subf %31, %34 : vector<8x3xf32>
    %36 = math.exp %35 : vector<8x3xf32>
    %cst_14 = arith.constant dense<0.000000e+00> : vector<8xf32>
    %37 = vector.multi_reduction <add>, %36, %cst_14 [1] : vector<8x3xf32> to vector<8xf32>
    %38 = vector.shape_cast %37 : vector<8xf32> to vector<8x1xf32>
    %39 = tpu.reciprocal %38 {approx = true} : vector<8x1xf32> -> vector<8x1xf32>
    %40 = vector.broadcast %39 : vector<8x1xf32> to vector<8x3xf32>
    %41 = arith.mulf %36, %40 : vector<8x3xf32>
    %c0_15 = arith.constant 0 : index
    %c0_16 = arith.constant 0 : index
    %42 = vector.load %arg4[%c0_15, %c0_16] : memref<8x3xf32, #tpu.memory_space<vmem>>, vector<8x3xf32>
    tpu.vector_store %arg4[%c0_15, %c0_16], %41 {strides = array<i32>} : memref<8x3xf32, #tpu.memory_space<vmem>>, vector<8x3xf32>,
    return
  }
  func.func @transform_0(%arg0: i32) -> (i32, i32, i32) {
    %c0_i32 = arith.constant 0 : i32
    %c0_i32_0 = arith.constant 0 : i32
    %c0_i32_1 = arith.constant 0 : i32
    %c0_i32_2 = arith.constant 0 : i32
    return %c0_i32, %c0_i32_0, %c0_i32_1 : i32, i32, i32
  }
  func.func @transform_1(%arg0: i32) -> (i32, i32) {
    %c0_i32 = arith.constant 0 : i32
    %c0_i32_0 = arith.constant 0 : i32
    return %arg0, %c0_i32 : i32, i32
  }
  func.func @transform_2(%arg0: i32) -> (i32, i32) {
    %c0_i32 = arith.constant 0 : i32
    %c0_i32_0 = arith.constant 0 : i32
    return %arg0, %c0_i32 : i32, i32
  }
  func.func @transform_3(%arg0: i32) -> (i32, i32) {
    %c0_i32 = arith.constant 0 : i32
    %c0_i32_0 = arith.constant 0 : i32
    return %arg0, %c0_i32 : i32, i32
  }
}

module attributes {stable_mosaic.version = 11 : i64} {
  func.func @kernel(%arg0: i32, %arg1: i32, %arg2: memref<16x16x128xbf16, #tpu.memory_space<vmem>>, %arg3: memref<128x128xbf16, #tpu.memory_space<vmem>>, %arg4: memref<1x128xf32, #tpu.memory_space<vmem>>, %arg5: memref<128x128xbf16, #tpu.memory_space<vmem>>, %arg6: memref<1x128xf32, #tpu.memory_space<vmem>>, %arg7: memref<128x128xbf16, #tpu.memory_space<vmem>>, %arg8: memref<1x128xf32, #tpu.memory_space<vmem>>, %arg9: memref<128x128xbf16, #tpu.memory_space<vmem>>, %arg10: memref<1x128xf32, #tpu.memory_space<vmem>>, %arg11: memref<16x128xf32, #tpu.memory_space<vmem>>, %arg12: memref<16x128xf32, #tpu.memory_space<vmem>>) attributes {dimension_semantics = [#tpu.dimension_semantics<parallel>, #tpu.dimension_semantics<arbitrary>], iteration_bounds = array<i64: 2, 1>, scalar_prefetch = 0 : i64, scratch_operands = 1 : i64, tpu.core_type = #tpu.core_type<tc>, window_params = [{transform_indices = @transform_0, window_bounds = array<i64: 16, 16, 128>}, {pipeline_mode = #tpu.pipeline_mode<synchronous>, transform_indices = @transform_1, window_bounds = array<i64: 128, 128>}, {pipeline_mode = #tpu.pipeline_mode<synchronous>, transform_indices = @transform_2, window_bounds = array<i64: 1, 128>}, {pipeline_mode = #tpu.pipeline_mode<synchronous>, transform_indices = @transform_3, window_bounds = array<i64: 128, 128>}, {pipeline_mode = #tpu.pipeline_mode<synchronous>, transform_indices = @transform_4, window_bounds = array<i64: 1, 128>}, {pipeline_mode = #tpu.pipeline_mode<synchronous>, transform_indices = @transform_5, window_bounds = array<i64: 128, 128>}, {pipeline_mode = #tpu.pipeline_mode<synchronous>, transform_indices = @transform_6, window_bounds = array<i64: 1, 128>}, {pipeline_mode = #tpu.pipeline_mode<synchronous>, transform_indices = @transform_7, window_bounds = array<i64: 128, 128>}, {pipeline_mode = #tpu.pipeline_mode<synchronous>, transform_indices = @transform_8, window_bounds = array<i64: 1, 128>}, {transform_indices = @transform_9, window_bounds = array<i64: 16, 128>}]} {
    %c0_i32 = arith.constant 0 : i32
    %0 = arith.cmpi eq, %arg1, %c0_i32 : i32
    %1 = arith.extui %0 : i1 to i32
    %c0_i32_0 = arith.constant 0 : i32
    %2 = arith.cmpi ne, %1, %c0_i32_0 : i32
    scf.if %2 {
      %cst_15 = arith.constant 0.000000e+00 : f32
      %20 = vector.broadcast %cst_15 : f32 to vector<16x128xf32>
      %c0_16 = arith.constant 0 : index
      %c0_17 = arith.constant 0 : index
      %21 = vector.load %arg12[%c0_16, %c0_17] : memref<16x128xf32, #tpu.memory_space<vmem>>, vector<16x128xf32>
      tpu.vector_store %arg12[%c0_16, %c0_17], %20 {strides = array<i32>} : memref<16x128xf32, #tpu.memory_space<vmem>>, vector<16x128xf32>,
    } else {
    }
    %c0 = arith.constant 0 : index
    %c0_1 = arith.constant 0 : index
    %c0_2 = arith.constant 0 : index
    %3 = vector.load %arg2[%c0, %c0_1, %c0_2] : memref<16x16x128xbf16, #tpu.memory_space<vmem>>, vector<16x16x128xbf16>
    %4 = vector.shape_cast %3 : vector<16x16x128xbf16> to vector<256x128xbf16>
    %c0_3 = arith.constant 0 : index
    %c0_4 = arith.constant 0 : index
    %5 = vector.load %arg3[%c0_3, %c0_4] : memref<128x128xbf16, #tpu.memory_space<vmem>>, vector<128x128xbf16>
    %cst = arith.constant dense<0.000000e+00> : vector<256x128xf32>
    %6 = tpu.matmul %4, %5, %cst {dimension_numbers = #tpu.dot_dimension_numbers<[1], [0], [0], [1], [0, 0, 1, 1], [], []>} : vector<256x128xbf16>, vector<128x128xbf16>, vector<256x128xf32> -> vector<256x128xf32>
    %c0_5 = arith.constant 0 : index
    %c0_6 = arith.constant 0 : index
    %7 = vector.load %arg4[%c0_5, %c0_6] : memref<1x128xf32, #tpu.memory_space<vmem>>, vector<1x128xf32>
    %8 = vector.broadcast %7 : vector<1x128xf32> to vector<256x128xf32>
    %9 = arith.addf %6, %8 : vector<256x128xf32>
    %cst_7 = arith.constant 0.000000e+00 : f32
    %10 = vector.broadcast %cst_7 : f32 to vector<256x128xf32>
    %11 = arith.maximumf %9, %10 : vector<256x128xf32>
    %12 = vector.shape_cast %11 : vector<256x128xf32> to vector<16x16x128xf32>
    %c0_8 = arith.constant 0 : index
    %c0_9 = arith.constant 0 : index
    %13 = vector.load %arg12[%c0_8, %c0_9] : memref<16x128xf32, #tpu.memory_space<vmem>>, vector<16x128xf32>
    %cst_10 = arith.constant dense<0.000000e+00> : vector<16x128xf32>
    %14 = vector.multi_reduction <add>, %12, %cst_10 [1] : vector<16x16x128xf32> to vector<16x128xf32>
    %15 = arith.addf %13, %14 : vector<16x128xf32>
    %c0_11 = arith.constant 0 : index
    %c0_12 = arith.constant 0 : index
    %16 = vector.load %arg12[%c0_11, %c0_12] : memref<16x128xf32, #tpu.memory_space<vmem>>, vector<16x128xf32>
    tpu.vector_store %arg12[%c0_11, %c0_12], %15 {strides = array<i32>} : memref<16x128xf32, #tpu.memory_space<vmem>>, vector<16x128xf32>,
    %c0_i32_13 = arith.constant 0 : i32
    %17 = arith.cmpi eq, %arg1, %c0_i32_13 : i32
    %18 = arith.extui %17 : i1 to i32
    %c0_i32_14 = arith.constant 0 : i32
    %19 = arith.cmpi ne, %18, %c0_i32_14 : i32
    scf.if %19 {
      %c0_15 = arith.constant 0 : index
      %c0_16 = arith.constant 0 : index
      %20 = vector.load %arg12[%c0_15, %c0_16] : memref<16x128xf32, #tpu.memory_space<vmem>>, vector<16x128xf32>
      %cst_17 = arith.constant 6.250000e-02 : f32
      %21 = vector.broadcast %cst_17 : f32 to vector<16x128xf32>
      %22 = arith.mulf %20, %21 : vector<16x128xf32>
      %23 = arith.truncf %22 : vector<16x128xf32> to vector<16x128xbf16>
      %c0_18 = arith.constant 0 : index
      %c0_19 = arith.constant 0 : index
      %24 = vector.load %arg5[%c0_18, %c0_19] : memref<128x128xbf16, #tpu.memory_space<vmem>>, vector<128x128xbf16>
      %cst_20 = arith.constant dense<0.000000e+00> : vector<16x128xf32>
      %25 = tpu.matmul %23, %24, %cst_20 {dimension_numbers = #tpu.dot_dimension_numbers<[1], [0], [0], [1], [0, 0, 1, 1], [], []>} : vector<16x128xbf16>, vector<128x128xbf16>, vector<16x128xf32> -> vector<16x128xf32>
      %c0_21 = arith.constant 0 : index
      %c0_22 = arith.constant 0 : index
      %26 = vector.load %arg6[%c0_21, %c0_22] : memref<1x128xf32, #tpu.memory_space<vmem>>, vector<1x128xf32>
      %27 = vector.broadcast %26 : vector<1x128xf32> to vector<16x128xf32>
      %28 = arith.addf %25, %27 : vector<16x128xf32>
      %cst_23 = arith.constant 0.000000e+00 : f32
      %29 = vector.broadcast %cst_23 : f32 to vector<16x128xf32>
      %30 = arith.maximumf %28, %29 : vector<16x128xf32>
      %31 = arith.truncf %30 : vector<16x128xf32> to vector<16x128xbf16>
      %c0_24 = arith.constant 0 : index
      %c0_25 = arith.constant 0 : index
      %32 = vector.load %arg7[%c0_24, %c0_25] : memref<128x128xbf16, #tpu.memory_space<vmem>>, vector<128x128xbf16>
      %cst_26 = arith.constant dense<0.000000e+00> : vector<16x128xf32>
      %33 = tpu.matmul %31, %32, %cst_26 {dimension_numbers = #tpu.dot_dimension_numbers<[1], [0], [0], [1], [0, 0, 1, 1], [], []>} : vector<16x128xbf16>, vector<128x128xbf16>, vector<16x128xf32> -> vector<16x128xf32>
      %c0_27 = arith.constant 0 : index
      %c0_28 = arith.constant 0 : index
      %34 = vector.load %arg8[%c0_27, %c0_28] : memref<1x128xf32, #tpu.memory_space<vmem>>, vector<1x128xf32>
      %35 = vector.broadcast %34 : vector<1x128xf32> to vector<16x128xf32>
      %36 = arith.addf %33, %35 : vector<16x128xf32>
      %37 = arith.negf %36 : vector<16x128xf32>
      %38 = math.exp %37 : vector<16x128xf32>
      %cst_29 = arith.constant 1.000000e+00 : f32
      %39 = vector.broadcast %cst_29 : f32 to vector<16x128xf32>
      %40 = arith.addf %39, %38 : vector<16x128xf32>
      %41 = arith.divf %39, %40 : vector<16x128xf32>
      %42 = arith.mulf %22, %41 : vector<16x128xf32>
      %43 = arith.truncf %42 : vector<16x128xf32> to vector<16x128xbf16>
      %c0_30 = arith.constant 0 : index
      %c0_31 = arith.constant 0 : index
      %44 = vector.load %arg9[%c0_30, %c0_31] : memref<128x128xbf16, #tpu.memory_space<vmem>>, vector<128x128xbf16>
      %cst_32 = arith.constant dense<0.000000e+00> : vector<16x128xf32>
      %45 = tpu.matmul %43, %44, %cst_32 {dimension_numbers = #tpu.dot_dimension_numbers<[1], [0], [0], [1], [0, 0, 1, 1], [], []>} : vector<16x128xbf16>, vector<128x128xbf16>, vector<16x128xf32> -> vector<16x128xf32>
      %c0_33 = arith.constant 0 : index
      %c0_34 = arith.constant 0 : index
      %46 = vector.load %arg10[%c0_33, %c0_34] : memref<1x128xf32, #tpu.memory_space<vmem>>, vector<1x128xf32>
      %47 = vector.broadcast %46 : vector<1x128xf32> to vector<16x128xf32>
      %48 = arith.addf %45, %47 : vector<16x128xf32>
      %c0_35 = arith.constant 0 : index
      %c0_36 = arith.constant 0 : index
      %49 = vector.load %arg11[%c0_35, %c0_36] : memref<16x128xf32, #tpu.memory_space<vmem>>, vector<16x128xf32>
      tpu.vector_store %arg11[%c0_35, %c0_36], %48 {strides = array<i32>} : memref<16x128xf32, #tpu.memory_space<vmem>>, vector<16x128xf32>,
    } else {
    }
    return
  }
  func.func @transform_0(%arg0: i32, %arg1: i32) -> (i32, i32, i32) {
    %c0_i32 = arith.constant 0 : i32
    %c0_i32_0 = arith.constant 0 : i32
    return %arg0, %arg1, %c0_i32 : i32, i32, i32
  }
  func.func @transform_1(%arg0: i32, %arg1: i32) -> (i32, i32) {
    %c0_i32 = arith.constant 0 : i32
    %c0_i32_0 = arith.constant 0 : i32
    %c0_i32_1 = arith.constant 0 : i32
    return %c0_i32, %c0_i32_0 : i32, i32
  }
  func.func @transform_2(%arg0: i32, %arg1: i32) -> (i32, i32) {
    %c0_i32 = arith.constant 0 : i32
    %c0_i32_0 = arith.constant 0 : i32
    %c0_i32_1 = arith.constant 0 : i32
    return %c0_i32, %c0_i32_0 : i32, i32
  }
  func.func @transform_3(%arg0: i32, %arg1: i32) -> (i32, i32) {
    %c0_i32 = arith.constant 0 : i32
    %c0_i32_0 = arith.constant 0 : i32
    %c0_i32_1 = arith.constant 0 : i32
    return %c0_i32, %c0_i32_0 : i32, i32
  }
  func.func @transform_4(%arg0: i32, %arg1: i32) -> (i32, i32) {
    %c0_i32 = arith.constant 0 : i32
    %c0_i32_0 = arith.constant 0 : i32
    %c0_i32_1 = arith.constant 0 : i32
    return %c0_i32, %c0_i32_0 : i32, i32
  }
  func.func @transform_5(%arg0: i32, %arg1: i32) -> (i32, i32) {
    %c0_i32 = arith.constant 0 : i32
    %c0_i32_0 = arith.constant 0 : i32
    %c0_i32_1 = arith.constant 0 : i32
    return %c0_i32, %c0_i32_0 : i32, i32
  }
  func.func @transform_6(%arg0: i32, %arg1: i32) -> (i32, i32) {
    %c0_i32 = arith.constant 0 : i32
    %c0_i32_0 = arith.constant 0 : i32
    %c0_i32_1 = arith.constant 0 : i32
    return %c0_i32, %c0_i32_0 : i32, i32
  }
  func.func @transform_7(%arg0: i32, %arg1: i32) -> (i32, i32) {
    %c0_i32 = arith.constant 0 : i32
    %c0_i32_0 = arith.constant 0 : i32
    %c0_i32_1 = arith.constant 0 : i32
    return %c0_i32, %c0_i32_0 : i32, i32
  }
  func.func @transform_8(%arg0: i32, %arg1: i32) -> (i32, i32) {
    %c0_i32 = arith.constant 0 : i32
    %c0_i32_0 = arith.constant 0 : i32
    %c0_i32_1 = arith.constant 0 : i32
    return %c0_i32, %c0_i32_0 : i32, i32
  }
  func.func @transform_9(%arg0: i32, %arg1: i32) -> (i32, i32) {
    %c0_i32 = arith.constant 0 : i32
    %c0_i32_0 = arith.constant 0 : i32
    return %arg0, %c0_i32 : i32, i32
  }
}

</mosaic_0001>

<bundles_post_ra>
// kernel: dssmls_forward.3
= control target key start
LH: loop header
LB: loop body
LE: loop exit
PB: predicated region body
PF: predicated region fallthrough
CT: control target
= control target key end

     0   :  { %vm16_vm0 = vcmask 1043456   ;;  %v61_v3 = vlaneseq  ;;  %v195_v12 = vmov 0.0   ;;  %vm52_vm2 = vcmask 1041409   ;;  %s243_s0 = inlined_call_operand.vmem [shape: f32[3,4,128], index: 0, kind: input, shape index: {}]   ;;  %s244_s1 = inlined_call_operand.vmem [shape: f32[8,128], index: 1, kind: input, shape index: {}]   ;;  %s245_s2 = inlined_call_operand.vmem [shape: f32[8,3], index: 2, kind: output, shape index: {0}]   ;;  %s246_s3 = inlined_call_operand.vmem [shape: f32[8,3], index: 3, kind: output, shape index: {1}]  }
   0x1   :  { %v13_v0 = vld [vmem:[%s243_s0] sm:$0xf]  ;;  %v14_v1 = vld [vmem:[%s243_s0 + $0x4] sm:$0xf]  ;;  %v15_v2 = vld [vmem:[%s243_s0 + $0x8] sm:$0xf]  ;;  %184 = vmatprep.subr.mxu0 %v195_v12 }
   0x2   :  { %v17_v4 = vsel %vm16_vm0, %v13_v0, 0.0  ;;  %v24_v5 = vsel %vm16_vm0, %v14_v1, 0.0  ;;  %v31_v6 = vsel %vm16_vm0, %v15_v2, 0.0  ;;  %v42_v7 = vld [vmem:[%s244_s1] sm:$0xff]  ;;  %v62_v11 = vand.u32 127, %v61_v3 }
   0x3   :  { %v18_v8 = vrot.slane %v17_v4, 4  ;;  %v25_v9 = vrot.slane %v24_v5, 4  ;;  %v32_v10 = vrot.slane %v31_v6, 4  ;;  %v66_v13 = vmul.f32 -2.0, %v42_v7 }
   0x4   :  { %vm63_vm1 = vcmp.eq.s32.totalorder %v62_v11, 64  ;;  %vm54_vm3 = vcmask 1042434   ;;  %vm57_vm4 = vcmask 1042432   ;;  %vm196_vm5 = vmmov 0  }
   0x5   :  { %v19_v14 = vadd.f32 %v18_v8, %v17_v4  ;;  %v26_v15 = vadd.f32 %v25_v9, %v24_v5  ;;  %v33_v16 = vadd.f32 %v32_v10, %v31_v6  ;;  %v181_v17 = vsel %vm63_vm1, 1.0, %v195_v12  ;;  %186 = vmatprep.mubr.msk.f32.mxu0 %vm196_vm5, %v195_v12 }
   0x6   :  { %v67_v21 = vadd.f32 %v181_v17, %v66_v13  ;;  %v43_v40 = vmul.f32 %v42_v7, %v42_v7  ;;  %vm158_vm6 = vcmask 23552  }
   0x7   :  { %v20_v18 = vrot.slane %v19_v14, 2  ;;  %v27_v19 = vrot.slane %v26_v15, 2  ;;  %v34_v20 = vrot.slane %v33_v16, 2 }
   0x9   :  { %v21_v22 = vadd.f32 %v20_v18, %v19_v14  ;;  %v28_v23 = vadd.f32 %v27_v19, %v26_v15  ;;  %v35_v24 = vadd.f32 %v34_v20, %v33_v16 }
   0xb   :  { %v22_v25 = vrot.slane %v21_v22, 1  ;;  %v29_v26 = vrot.slane %v28_v23, 1  ;;  %v36_v27 = vrot.slane %v35_v24, 1 }
   0xd   :  { %v23_v28 = vadd.f32 %v22_v25, %v21_v22  ;;  %v30_v29 = vadd.f32 %v29_v26, %v28_v23  ;;  %v37_v30 = vadd.f32 %v36_v27, %v35_v24 }
   0xf   :  { %v39_v31 = vmul.f32 0.25, %v23_v28  ;;  %v40_v32 = vmul.f32 0.25, %v30_v29  ;;  %v41_v33 = vmul.f32 0.25, %v37_v30 }
  0x11   :  { %v46_v34 = vmul.f32 %v39_v31, %v39_v31  ;;  %v47_v35 = vmul.f32 %v40_v32, %v40_v32  ;;  %v48_v36 = vmul.f32 %v41_v33, %v41_v33 }
  0x13   :  { %v53_v37 = vsel %vm52_vm2, %v47_v35, %v46_v34 }
  0x14   :  { %v55_v38 = vsel %vm54_vm3, %v48_v36, %v53_v37 }
  0x15   :  { %v58_v39 = vsel %vm57_vm4, %v55_v38, 0.0 }
  0x16   :  { %59 = vadd.xlane.f32.xlu0 %v58_v39 }
  0x1a   :  { %44 = vadd.xlane.f32.xlu0 %v43_v40 }
  0x9f   :  { %v60_v41 = vpop.xlane.xlu0 %59 }
  0xa0   :  { %v68_v42 = vmul.f32 %v181_v17, %v60_v41 }
  0xa2   :  { %v70_v43 = vrot.slane %v68_v42, 1  ;;  %v71_v44 = vrot.slane %v68_v42, 2  ;;  %v75_v47 = vadd.f32 %v68_v42, %v39_v31 }
  0xa3   :  { %v45_v52 = vpop.xlane.xlu0 %44 }
  0xa4   :  { %v76_v45 = vadd.f32 %v70_v43, %v40_v32  ;;  %v77_v46 = vadd.f32 %v71_v44, %v41_v33 }
  0xa6   :  { %v81_v48 = vrot.slane %v76_v45, 7  ;;  %v83_v49 = vrot.slane %v77_v46, 6 }
  0xa8   :  { %v82_v50 = vsel %vm52_vm2, %v81_v48, %v75_v47 }
  0xa9   :  { %v84_v51 = vsel %vm54_vm3, %v83_v49, %v82_v50 }
  0xaa   :  { %185 = vmatpush3.xpose.msra.mxu0 %v84_v51 }
  0xad   :  { %187 = vmatmul.mubr.f32.vlgmr.msra.gmra.mxu0 %v67_v21 }
 0x16d   :  { %v152_v53 = vpop.f32.mrf.mxu0 }
 0x16e   :  { %v156_v54 = vadd.f32 %v152_v53, %v45_v52 }
 0x16f   :  { %v188_v55 = vpop.f32.mrf.mxu0 }
 0x170   :  { %v157_v56 = vmax.f32 %v156_v54, 0.0 }
 0x172   :  { %v160_v57 = vsub.f32 0.0, %v157_v56  ;;  %159 = vst.msk [vmem:[%s245_s2] sm:$0xff] %vm158_vm6, %v157_v56 }
 0x174   :  { %v161_v58 = vsel %vm158_vm6, %v160_v57, -inf }
 0x175   :  { %162 = vmax.xlane.f32.xlu1 %v161_v58 }
 0x1fe   :  { %v163_v59 = vpop.xlane.xlu1 %162 }
 0x1ff   :  { %v164_v60 = vsub.f32 %v160_v57, %v163_v59 }
 0x201   :  { %v165_v61 = vmul.f32 1.442695, %v164_v60 }
 0x203   :  { %191 = vpow2.f32 %v165_v61 }
 0x210   :  { %v192_v62 = vpop.eup %191 }
 0x211   :  { %v167_v63 = vsel %vm158_vm6, %v192_v62, 0.0 }
 0x212   :  { %168 = vadd.xlane.f32.xlu1 %v167_v63 }
 0x29b   :  { %v169_v0 = vpop.xlane.xlu1 %168 }
 0x29c   :  { %193 = vrcp.f32 %v169_v0 }
 0x2a9   :  { %v194_v1 = vpop.eup %193 }
 0x2aa   :  { %v171_v2 = vmul.f32 %v194_v1, %v192_v62 }
 0x2ac   :  { %172 = vst.msk [vmem:[%s246_s3] sm:$0xff] %vm158_vm6, %v171_v2 }

// kernel: dssmls_forward.2
= control target key start
LH: loop header
LB: loop body
LE: loop exit
PB: predicated region body
PF: predicated region fallthrough
CT: control target
= control target key end

     0   :  { %s1742_s30 = smov 0   ;;  %s1744_s10 = smov 0   ;;  %s1992_s0 = inlined_call_operand.vmem [shape: bf16[32,16,128], index: 0, kind: input, shape index: {}]   ;;  %s1993_s1 = inlined_call_operand.vmem [shape: bf16[128,128], index: 1, kind: input, shape index: {}]   ;;  %s1994_s2 = inlined_call_operand.vmem [shape: f32[1,128], index: 2, kind: input, shape index: {}]   ;;  %s1995_s3 = inlined_call_operand.vmem [shape: bf16[128,128], index: 3, kind: input, shape index: {}]   ;;  %s1996_s4 = inlined_call_operand.vmem [shape: f32[1,128], index: 4, kind: input, shape index: {}]   ;;  %s1997_s5 = inlined_call_operand.vmem [shape: bf16[128,128], index: 5, kind: input, shape index: {}]   ;;  %s1998_s6 = inlined_call_operand.vmem [shape: f32[1,128], index: 6, kind: input, shape index: {}]   ;;  %s1999_s7 = inlined_call_operand.vmem [shape: bf16[128,128], index: 7, kind: input, shape index: {}]   ;;  %s2000_s8 = inlined_call_operand.vmem [shape: f32[1,128], index: 8, kind: input, shape index: {}]   ;;  %s2001_s9 = inlined_call_operand.vmem [shape: f32[32,128], index: 9, kind: output, shape index: {}]  }
   0x1   :  { %s1746_s11 = smov 0  }
   0x2 LB: > { %s31_s12 = sadd.s32 1, %s1684_s10  ;;  %p1362_p0 = scmp.ge.s32.totalorder %s1688_s11, 1  ;;  %s1688_s11 = sphi %s1746_s11, %s19_s11   ;;  %s1684_s10 = sphi %s1744_s10, %s2003_s10   ;;  %s1680_s30 = sphi %s1742_s30, %s2002_s30  }
   0x3   : > { %p33_p1 = scmp.ge.s32.totalorder %s31_s12, 2  ;;  %p308_p2 = scmp.lt.s32.totalorder %s1688_s11, 3 }
   0x5   : > { %s2005_s12 = smov (%p33_p1, %s31_s12), 0  ;;  %p309_p3 = pnand %p1362_p0, %p308_p2 }
   0x6   : > { %s1363_s15 = sshll.u32 (!%p309_p3), %s1680_s30, 4 }
   0x7   : > { %312 = sbr.rel (%p309_p3) target bundleno = 962 (0x3c2), region = 56  ;;  %p351_p4 = scmp.lt.s32.totalorder (!%p309_p3), %s1363_s15, 31 }
   0xc   : > { %v1610_v0 = vld [vmem:[%s1993_s1 + $0x38] sm:$0xff]   ;;  %v1611_v1 = vld [vmem:[%s1993_s1 + $0x30] sm:$0xff]   ;;  %s2007_s15 = smov (!%p351_p4, %s1363_s15), 31  ;;  %v1612_v2 = vld [vmem:[%s1993_s1 + $0x28] sm:$0xff]   ;;  %v1690_v25 = vmov 0.0   ;;  %vm1691_vm0 = vmmov 0  }
   0xd   : > { %1476 = vmatprep.subr.bf16.mxu0 %v1610_v0  ;;  %s1424_s20 = sshll.u32 %s2007_s15, 3  ;;  %v1613_v3 = vld [vmem:[%s1993_s1 + $0x20] sm:$0xff]   ;;  %v1614_v5 = vld [vmem:[%s1993_s1 + $0x18] sm:$0xff]   ;;  %v1615_v6 = vld [vmem:[%s1993_s1 + $0x10] sm:$0xff]   ;;  %1524 = vmatprep.subr.bf16.mxu1 %v1690_v25  ;;  %vm896_vm1 = vcmask 1041409   ;;  %vm898_vm2 = vcmask 1042434  }
   0xe   : > { %1477 = vmatpush3.bf16.msra.mxu0 %v1610_v0  ;;  %s1775_s23 = scalar_lea.vmem %s1992_s0, %s1424_s20  ;;  %v1616_v7 = vld [vmem:[%s1993_s1 + $0x8] sm:$0xff]   ;;  %v1617_v8 = vld [vmem:[%s1993_s1] sm:$0xff]   ;;  %v1634_v24 = vld [vmem:[%s1995_s3 + $0x38] sm:$0xff]   ;;  %1540 = vmatprep.mubr.msk.bf16.mxu1 %vm1691_vm0, %v1690_v25  ;;  %vm900_vm3 = vcmask 1043459   ;;  %vm902_vm4 = vcmask 1044484   ;;  %vm904_vm5 = vcmask 1045509  }
   0xf   : > { %1478 = vmatprep.subr.bf16.mxu0 %v1611_v1  ;;  %v1618_v4 = vld [vmem:[%s1775_s23] sm:$0xff]   ;;  %v1619_v9 = vld [vmem:[%s1775_s23 + $0x8] sm:$0xff]   ;;  %v1620_v10 = vld [vmem:[%s1775_s23 + $0x10] sm:$0xff]   ;;  %1525 = vmatpush3.bf16.msra.mxu1 %v1634_v24  ;;  %vm906_vm6 = vcmask 1046534   ;;  %vm908_vm7 = vcmask 1047559   ;;  %s1366_s20 = sshll.u32 %s1680_s30, 1 }
  0x10   : > { %1492 = vmatprep.mubr.bf16.mxu0 %v1618_v4  ;;  %v1621_v11 = vld [vmem:[%s1775_s23 + $0x18] sm:$0xff]   ;;  %v1622_v12 = vld [vmem:[%s1775_s23 + $0x20] sm:$0xff]   ;;  %v1623_v13 = vld [vmem:[%s1775_s23 + $0x28] sm:$0xff]   ;;  %1526 = vmatprep.subr.bf16.mxu1 %v1690_v25  ;;  %p362_p5 = scmp.lt.s32.totalorder %s1366_s20, 3 }
  0x11   : > { %v1624_v14 = vld [vmem:[%s1775_s23 + $0x30] sm:$0xff]   ;;  %v1625_v15 = vld [vmem:[%s1775_s23 + $0x38] sm:$0xff]   ;;  %v1626_v16 = vld [vmem:[%s1775_s23 + $0x40] sm:$0xff]  }
  0x12   : > { %1479 = vmatpush3.bf16.msra.mxu0 %v1611_v1  ;;  %v1627_v17 = vld [vmem:[%s1775_s23 + $0x48] sm:$0xff]   ;;  %v1628_v18 = vld [vmem:[%s1775_s23 + $0x50] sm:$0xff]   ;;  %v1629_v19 = vld [vmem:[%s1775_s23 + $0x58] sm:$0xff]   ;;  %s2009_s20 = smov (!%p362_p5, %s1366_s20), 3 }
  0x13   : > { %1480 = vmatprep.subr.bf16.mxu0 %v1612_v2  ;;  %v1630_v20 = vld [vmem:[%s1775_s23 + $0x60] sm:$0xff]   ;;  %v1631_v21 = vld [vmem:[%s1775_s23 + $0x68] sm:$0xff]   ;;  %v1632_v22 = vld [vmem:[%s1775_s23 + $0x70] sm:$0xff]   ;;  %s1367_s21 = sshll.u32 %s2009_s20, 3 }
  0x14   : > { %v1633_v23 = vld [vmem:[%s1775_s23 + $0x78] sm:$0xff]   ;;  %v1635_v26 = vld [vmem:[%s1995_s3 + $0x30] sm:$0xff]   ;;  %v1636_v27 = vld [vmem:[%s1995_s3 + $0x28] sm:$0xff]   ;;  %s365_s26 = scalar_lea.vmem %s2001_s9, %s1367_s21 }
  0x15   : > { %1527 = vmatpush3.bf16.msra.mxu1 %v1635_v26  ;;  %v1637_v28 = vld [vmem:[%s1995_s3 + $0x20] sm:$0xff]   ;;  %v1638_v29 = vld [vmem:[%s1995_s3 + $0x18] sm:$0xff]   ;;  %v1639_v30 = vld [vmem:[%s1995_s3 + $0x10] sm:$0xff]  }
  0x16   : > { %1481 = vmatpush3.bf16.msra.mxu0 %v1612_v2  ;;  %1528 = vmatprep.subr.bf16.mxu1 %v1690_v25  ;;  %v1640_v31 = vld [vmem:[%s1995_s3 + $0x8] sm:$0xff]   ;;  %v1641_v32 = vld [vmem:[%s1995_s3] sm:$0xff]  }
  0x17   : > { %1482 = vmatprep.subr.bf16.mxu0 %v1613_v3  ;;  %v1849_v39 = vld [vmem:[%s1994_s2] ss:$0 sm:$0xff] }
  0x19   : > { %1529 = vmatpush3.bf16.msra.mxu1 %v1636_v27 }
  0x1a   : > { %1483 = vmatpush3.bf16.msra.mxu0 %v1613_v3  ;;  %1530 = vmatprep.subr.bf16.mxu1 %v1690_v25 }
  0x1b   : > { %1484 = vmatprep.subr.bf16.mxu0 %v1614_v5 }
  0x1d   : > { %1531 = vmatpush3.bf16.msra.mxu1 %v1637_v28 }
  0x1e   : > { %1485 = vmatpush3.bf16.msra.mxu0 %v1614_v5  ;;  %1532 = vmatprep.subr.bf16.mxu1 %v1690_v25 }
  0x1f   : > { %1486 = vmatprep.subr.bf16.mxu0 %v1615_v6 }
  0x21   : > { %1533 = vmatpush3.bf16.msra.mxu1 %v1638_v29 }
  0x22   : > { %1487 = vmatpush3.bf16.msra.mxu0 %v1615_v6  ;;  %1534 = vmatprep.subr.bf16.mxu1 %v1690_v25 }
  0x23   : > { %1488 = vmatprep.subr.bf16.mxu0 %v1616_v7 }
  0x25   : > { %1535 = vmatpush3.bf16.msra.mxu1 %v1639_v30 }
  0x26   : > { %1489 = vmatpush3.bf16.msra.mxu0 %v1616_v7  ;;  %1536 = vmatprep.subr.bf16.mxu1 %v1690_v25 }
  0x27   : > { %1490 = vmatprep.subr.bf16.mxu0 %v1617_v8 }
  0x29   : > { %1537 = vmatpush3.bf16.msra.mxu1 %v1640_v31 }
  0x2a   : > { %1491 = vmatpush3.bf16.msra.mxu0 %v1617_v8  ;;  %1538 = vmatprep.subr.bf16.mxu1 %v1690_v25 }
  0x2b   : > { %1564 = vmatprep.subr.bf16.mxu0 %v1690_v25 }
  0x2d   : > { %1493 = vmatmul.mubr.bf16.vlgmr.msra.gmra.mxu0 %v1619_v9  ;;  %1539 = vmatpush3.bf16.msra.mxu1 %v1641_v32 }
  0x2e   : > { %1496 = vmatprep.mubr.bf16.mxu0 %v1620_v10  ;;  %1544 = vmatprep.subr.bf16.mxu1 %v1690_v25 }
  0x35   : > { %1497 = vmatmul.mubr.bf16.gmra.mxu0 %v1621_v11 }
  0x36   : > { %1500 = vmatprep.mubr.bf16.mxu0 %v1622_v12 }
  0x3d   : > { %1501 = vmatmul.mubr.bf16.gmra.mxu0 %v1623_v13 }
  0x3e   : > { %1504 = vmatprep.mubr.bf16.mxu0 %v1624_v14 }
  0x45   : > { %1505 = vmatmul.mubr.bf16.gmra.mxu0 %v1625_v15 }
  0x46   : > { %1508 = vmatprep.mubr.bf16.mxu0 %v1626_v16 }
  0x4d   : > { %1509 = vmatmul.mubr.bf16.gmra.mxu0 %v1627_v17 }
  0x4e   : > { %1512 = vmatprep.mubr.bf16.mxu0 %v1628_v18 }
  0x55   : > { %1513 = vmatmul.mubr.bf16.gmra.mxu0 %v1629_v19 }
  0x56   : > { %1516 = vmatprep.mubr.bf16.mxu0 %v1630_v20 }
  0x5d   : > { %1517 = vmatmul.mubr.bf16.gmra.mxu0 %v1631_v21 }
  0x5e   : > { %1520 = vmatprep.mubr.bf16.mxu0 %v1632_v22 }
  0x65   : > { %1521 = vmatmul.mubr.bf16.gmra.mxu0 %v1633_v23 }
  0x66   : > { %1580 = vmatprep.mubr.msk.bf16.mxu0 %vm1691_vm0, %v1690_v25 }
  0xed   : > { %v1494_v33 = vpop.f32.mrf.mxu0 }
  0xee   : > { %v616_v44 = vadd.f32 %v1494_v33, %v1849_v39 }
  0xef   : > { %v607_v34 = vpop.f32.mrf.mxu0 }
  0xf0   : > { %v608_v45 = vadd.f32 %v1849_v39, %v607_v34  ;;  %v736_v50 = vmax.f32 %v616_v44, 0.0 }
  0xf1   : > { %v1495_v35 = vpop.f32.mrf.mxu0 }
  0xf2   : > { %v619_v41 = vadd.f32 %v1495_v35, %v1849_v39  ;;  %v734_v51 = vmax.f32 %v608_v45, 0.0 }
  0xf3   : > { %v610_v36 = vpop.f32.mrf.mxu0 }
  0xf4   : > { %v611_v42 = vadd.f32 %v1849_v39, %v610_v36  ;;  %v737_v47 = vmax.f32 %v619_v41, 0.0 }
  0xf5   : > { %v1498_v37 = vpop.f32.mrf.mxu0 }
  0xf6   : > { %v735_v48 = vmax.f32 %v611_v42, 0.0  ;;  %v775_v53 = vadd.f32 %v737_v47, %v736_v50  ;;  %v632_v59 = vadd.f32 %v1498_v37, %v1849_v39 }
  0xf7   : > { %v623_v38 = vpop.f32.mrf.mxu0 }
  0xf8   : > { %v768_v54 = vadd.f32 %v735_v48, %v734_v51  ;;  %v776_v58 = vrot.slane %v775_v53, 4  ;;  %v740_v2 = vmax.f32 %v632_v59, 0.0  ;;  %v624_v3 = vadd.f32 %v1849_v39, %v623_v38 }
  0xf9   : > { %v1499_v40 = vpop.f32.mrf.mxu0 }
  0xfa   : > { %v635_v56 = vadd.f32 %v1499_v40, %v1849_v39  ;;  %v769_v60 = vrot.slane %v768_v54, 4  ;;  %v777_v1 = vadd.f32 %v776_v58, %v775_v53  ;;  %v738_v10 = vmax.f32 %v624_v3, 0.0 }
  0xfb   : > { %v626_v43 = vpop.f32.mrf.mxu0 }
  0xfc   : > { %v741_v62 = vmax.f32 %v635_v56, 0.0  ;;  %v627_v63 = vadd.f32 %v1849_v39, %v626_v43  ;;  %v770_v4 = vadd.f32 %v769_v60, %v768_v54  ;;  %v778_v9 = vrot.slane %v777_v1, 2 }
  0xfd   : > { %v1502_v46 = vpop.f32.mrf.mxu0 }
  0xfe   : > { %v789_v6 = vadd.f32 %v741_v62, %v740_v2  ;;  %v739_v7 = vmax.f32 %v627_v63, 0.0  ;;  %v771_v12 = vrot.slane %v770_v4, 2  ;;  %v779_v18 = vadd.f32 %v778_v9, %v777_v1 }
  0xff   : > { %v639_v49 = vpop.f32.mrf.mxu0  ;;  %v648_v22 = vadd.f32 %v1502_v46, %v1849_v39 }
 0x100   : > { %v790_v14 = vrot.slane %v789_v6, 4  ;;  %v782_v15 = vadd.f32 %v739_v7, %v738_v10  ;;  %v640_v16 = vadd.f32 %v1849_v39, %v639_v49  ;;  %v772_v21 = vadd.f32 %v771_v12, %v770_v4 }
 0x101   : > { %v1503_v52 = vpop.f32.mrf.mxu0  ;;  %v780_v34 = vrot.slane %v779_v18, 1  ;;  %v744_v38 = vmax.f32 %v648_v22, 0.0 }
 0x102   : > { %v651_v19 = vadd.f32 %v1503_v52, %v1849_v39  ;;  %v791_v27 = vadd.f32 %v790_v14, %v789_v6  ;;  %v783_v28 = vrot.slane %v782_v15, 4  ;;  %v742_v29 = vmax.f32 %v640_v16, 0.0 }
 0x103   : > { %v642_v55 = vpop.f32.mrf.mxu0  ;;  %v773_v44 = vrot.slane %v772_v21, 1  ;;  %v781_v58 = vadd.f32 %v780_v34, %v779_v18 }
 0x104   : > { %v643_v11 = vadd.f32 %v1849_v39, %v642_v55  ;;  %v745_v35 = vmax.f32 %v651_v19, 0.0  ;;  %v792_v45 = vrot.slane %v791_v27, 2  ;;  %v784_v46 = vadd.f32 %v783_v28, %v782_v15 }
 0x105   : > { %v1506_v57 = vpop.f32.mrf.mxu0  ;;  %v774_v63 = vadd.f32 %v773_v44, %v772_v21 }
 0x106   : > { %v743_v20 = vmax.f32 %v643_v11, 0.0  ;;  %v803_v53 = vadd.f32 %v745_v35, %v744_v38  ;;  %v664_v55 = vadd.f32 %v1506_v57, %v1849_v39 }
 0x107   : > { %v655_v61 = vpop.f32.mrf.mxu0  ;;  %v1876_v16 = vsel %vm896_vm1, %v781_v58, %v774_v63 }
 0x108   : > { %v796_v36 = vadd.f32 %v743_v20, %v742_v29  ;;  %v656_v40 = vadd.f32 %v1849_v39, %v655_v61  ;;  %v804_v57 = vrot.slane %v803_v53, 4  ;;  %v748_v10 = vmax.f32 %v664_v55, 0.0 }
 0x109   : > { %v1507_v0 = vpop.f32.mrf.mxu0 }
 0x10a   : > { %v667_v47 = vadd.f32 %v1507_v0, %v1849_v39  ;;  %v797_v54 = vrot.slane %v796_v36, 4  ;;  %v746_v59 = vmax.f32 %v656_v40, 0.0  ;;  %v785_v0 = vrot.slane %v784_v46, 2 }
 0x10b   : > { %v658_v5 = vpop.f32.mrf.mxu0 }
 0x10c   : > { %v659_v31 = vadd.f32 %v1849_v39, %v658_v5  ;;  %v749_v1 = vmax.f32 %v667_v47, 0.0  ;;  %v798_v9 = vadd.f32 %v797_v54, %v796_v36  ;;  %v786_v19 = vadd.f32 %v785_v0, %v784_v46 }
 0x10d   : > { %v1510_v8 = vpop.f32.mrf.mxu0 }
 0x10e   : > { %v680_v32 = vadd.f32 %v1510_v8, %v1849_v39  ;;  %v747_v48 = vmax.f32 %v659_v31, 0.0  ;;  %v793_v8 = vadd.f32 %v792_v45, %v791_v27  ;;  %v799_v29 = vrot.slane %v798_v9, 2 }
 0x10f   : > { %v671_v13 = vpop.f32.mrf.mxu0  ;;  %v787_v38 = vrot.slane %v786_v19, 1 }
 0x110   : > { %v672_v23 = vadd.f32 %v1849_v39, %v671_v13  ;;  %v752_v49 = vmax.f32 %v680_v32, 0.0  ;;  %v810_v3 = vadd.f32 %v747_v48, %v746_v59 }
 0x111   : > { %v1511_v17 = vpop.f32.mrf.mxu0  ;;  %v788_v58 = vadd.f32 %v787_v38, %v786_v19 }
 0x112   : > { %v683_v24 = vadd.f32 %v1511_v17, %v1849_v39  ;;  %v750_v41 = vmax.f32 %v672_v23, 0.0  ;;  %v817_v17 = vadd.f32 %v749_v1, %v748_v10  ;;  %v811_v20 = vrot.slane %v810_v3, 4 }
 0x113   : > { %v674_v26 = vpop.f32.mrf.mxu0 }
 0x114   : > { %v675_v30 = vadd.f32 %v1849_v39, %v674_v26  ;;  %v753_v42 = vmax.f32 %v683_v24, 0.0  ;;  %v794_v24 = vrot.slane %v793_v8, 1  ;;  %v805_v26 = vadd.f32 %v804_v57, %v803_v53 }
 0x115   : > { %v1514_v33 = vpop.f32.mrf.mxu0  ;;  %v818_v34 = vrot.slane %v817_v17, 4  ;;  %v812_v40 = vadd.f32 %v811_v20, %v810_v3  ;;  %v800_v53 = vadd.f32 %v799_v29, %v798_v9 }
 0x116   : > { %v751_v37 = vmax.f32 %v675_v30, 0.0  ;;  %v696_v51 = vadd.f32 %v1514_v33, %v1849_v39  ;;  %v831_v60 = vadd.f32 %v753_v42, %v752_v49  ;;  %v806_v44 = vrot.slane %v805_v26, 2 }
 0x117   : > { %v687_v43 = vpop.f32.mrf.mxu0  ;;  %v795_v48 = vadd.f32 %v794_v24, %v793_v8  ;;  %v819_v54 = vadd.f32 %v818_v34, %v817_v17  ;;  %v813_v59 = vrot.slane %v812_v40, 2  ;;  %v801_v8 = vrot.slane %v800_v53, 1 }
 0x118   : > { %v824_v50 = vadd.f32 %v751_v37, %v750_v41  ;;  %v688_v61 = vadd.f32 %v1849_v39, %v687_v43  ;;  %v756_v5 = vmax.f32 %v696_v51, 0.0  ;;  %v832_v11 = vrot.slane %v831_v60, 4 }
 0x119   : > { %v1515_v52 = vpop.f32.mrf.mxu0  ;;  %v807_v63 = vadd.f32 %v806_v44, %v805_v26  ;;  %v820_v57 = vrot.slane %v819_v54, 2  ;;  %v899_v24 = vsel %vm898_vm2, %v788_v58, %v1876_v16  ;;  %v802_v29 = vadd.f32 %v801_v8, %v800_v53  ;;  %v1642_v8 = vld [vmem:[%s1997_s5 + $0x38] sm:$0xff]  }
 0x11a   : > { %v699_v56 = vadd.f32 %v1515_v52, %v1849_v39  ;;  %v825_v4 = vrot.slane %v824_v50, 4  ;;  %v754_v12 = vmax.f32 %v688_v61, 0.0  ;;  %v833_v30 = vadd.f32 %v832_v11, %v831_v60 }
 0x11b   : > { %v690_v62 = vpop.f32.mrf.mxu0  ;;  %v814_v11 = vadd.f32 %v813_v59, %v812_v40  ;;  %v808_v26 = vrot.slane %v807_v63, 1 }
 0x11c   : > { %v757_v2 = vmax.f32 %v699_v56, 0.0  ;;  %v691_v6 = vadd.f32 %v1849_v39, %v690_v62  ;;  %v826_v21 = vadd.f32 %v825_v4, %v824_v50  ;;  %v834_v49 = vrot.slane %v833_v30, 2 }
 0x11d   : > { %v1518_v7 = vpop.f32.mrf.mxu0  ;;  %v809_v16 = vadd.f32 %v808_v26, %v807_v63 }
 0x11e   : > { %v845_v13 = vadd.f32 %v757_v2, %v756_v5  ;;  %v755_v14 = vmax.f32 %v691_v6, 0.0  ;;  %v712_v18 = vadd.f32 %v1518_v7, %v1849_v39  ;;  %v827_v41 = vrot.slane %v826_v21, 2 }
 0x11f   : > { %v703_v15 = vpop.f32.mrf.mxu0  ;;  %v835_v3 = vadd.f32 %v834_v49, %v833_v30 }
 0x120   : > { %v838_v22 = vadd.f32 %v755_v14, %v754_v12  ;;  %v704_v27 = vadd.f32 %v1849_v39, %v703_v15  ;;  %v846_v31 = vrot.slane %v845_v13, 4  ;;  %v760_v35 = vmax.f32 %v712_v18, 0.0 }
 0x121   : > { %v1519_v23 = vpop.f32.mrf.mxu0  ;;  %v828_v60 = vadd.f32 %v827_v41, %v826_v21  ;;  %v836_v20 = vrot.slane %v835_v3, 1 }
 0x122   : > { %v715_v28 = vadd.f32 %v1519_v23, %v1849_v39  ;;  %v839_v32 = vrot.slane %v838_v22, 4  ;;  %v758_v45 = vmax.f32 %v704_v27, 0.0  ;;  %v847_v50 = vadd.f32 %v846_v31, %v845_v13 }
 0x123   : > { %v706_v33 = vpop.f32.mrf.mxu0  ;;  %v829_v12 = vrot.slane %v828_v60, 1 }
 0x124   : > { %v761_v36 = vmax.f32 %v715_v28, 0.0  ;;  %v707_v37 = vadd.f32 %v1849_v39, %v706_v33  ;;  %v840_v42 = vadd.f32 %v839_v32, %v838_v22  ;;  %v848_v4 = vrot.slane %v847_v50, 2 }
 0x125   : > { %v1522_v43 = vpop.f32.mrf.mxu0  ;;  %v830_v30 = vadd.f32 %v829_v12, %v828_v60  ;;  %v815_v32 = vrot.slane %v814_v11, 1  ;;  %v1646_v12 = vld [vmem:[%s1997_s5 + $0x18] sm:$0xff]  }
 0x126   : > { %v859_v46 = vadd.f32 %v761_v36, %v760_v35  ;;  %v759_v47 = vmax.f32 %v707_v37, 0.0  ;;  %v841_v51 = vrot.slane %v840_v42, 2  ;;  %v728_v61 = vadd.f32 %v1522_v43, %v1849_v39 }
 0x127   : > { %v719_v52 = vpop.f32.mrf.mxu0  ;;  %v849_v21 = vadd.f32 %v848_v4, %v847_v50  ;;  %v837_v36 = vadd.f32 %v836_v20, %v835_v3  ;;  %v1393_v20 = vld [vmem:[%s1996_s4] ss:$0 sm:$0xff] }
 0x128   : > { %v860_v55 = vrot.slane %v859_v46, 4  ;;  %v852_v56 = vadd.f32 %v759_v47, %v758_v45  ;;  %v842_v0 = vadd.f32 %v841_v51, %v840_v42  ;;  %v720_v2 = vadd.f32 %v1849_v39, %v719_v52 }
 0x129   : > { %v1523_v62 = vpop.f32.mrf.mxu0  ;;  %v764_v13 = vmax.f32 %v728_v61, 0.0  ;;  %v850_v37 = vrot.slane %v849_v21, 1  ;;  %v901_v42 = vsel %vm900_vm3, %v795_v48, %v899_v24  ;;  %v910_v43 = vsel %vm896_vm1, %v837_v36, %v830_v30  ;;  %v1653_v30 = vld [vmem:[%s1999_s7 + $0x20] sm:$0xff]  }
 0x12a   : > { %v853_v1 = vrot.slane %v852_v56, 4  ;;  %v861_v5 = vadd.f32 %v860_v55, %v859_v46  ;;  %v731_v6 = vadd.f32 %v1523_v62, %v1849_v39  ;;  %v843_v15 = vrot.slane %v842_v0, 1 }
 0x12b   : > { %v722_v7 = vpop.f32.mrf.mxu0  ;;  %v762_v18 = vmax.f32 %v720_v2, 0.0  ;;  %v903_v45 = vsel %vm902_vm4, %v802_v29, %v901_v42  ;;  %v816_v46 = vadd.f32 %v815_v32, %v814_v11  ;;  %v851_v52 = vadd.f32 %v850_v37, %v849_v21  ;;  %v1645_v11 = vld [vmem:[%s1997_s5 + $0x20] sm:$0xff]   ;;  %v1655_v32 = vld [vmem:[%s1999_s7 + $0x10] sm:$0xff]  }
 0x12c   : > { %v854_v9 = vadd.f32 %v853_v1, %v852_v56  ;;  %v723_v10 = vadd.f32 %v1849_v39, %v722_v7  ;;  %v765_v14 = vmax.f32 %v731_v6, 0.0  ;;  %v862_v22 = vrot.slane %v861_v5, 2 }
 0x12d   : > { %v821_v39 = vadd.f32 %v820_v57, %v819_v54  ;;  %v844_v33 = vadd.f32 %v843_v15, %v842_v0  ;;  %v905_v48 = vsel %vm904_vm5, %v809_v16, %v903_v45  ;;  %v1649_v15 = vld [vmem:[%s1997_s5] sm:$0xff]  }
 0x12e   : > { %v855_v17 = vrot.slane %v854_v9, 2  ;;  %v763_v19 = vmax.f32 %v723_v10, 0.0  ;;  %v873_v23 = vadd.f32 %v765_v14, %v764_v13  ;;  %v863_v38 = vadd.f32 %v862_v22, %v861_v5  ;;  %v1644_v10 = vld [vmem:[%s1997_s5 + $0x28] sm:$0xff]   ;;  %v1647_v13 = vld [vmem:[%s1997_s5 + $0x10] sm:$0xff]  }
 0x12f   : > { %v911_v47 = vsel %vm898_vm2, %v844_v33, %v910_v43  ;;  %v822_v51 = vrot.slane %v821_v39, 1  ;;  %v907_v60 = vsel %vm906_vm6, %v816_v46, %v905_v48  ;;  %v1648_v14 = vld [vmem:[%s1997_s5 + $0x8] sm:$0xff]  }
 0x130   : > { %v856_v27 = vadd.f32 %v855_v17, %v854_v9  ;;  %v866_v28 = vadd.f32 %v763_v19, %v762_v18  ;;  %v874_v31 = vrot.slane %v873_v23, 4  ;;  %v864_v53 = vrot.slane %v863_v38, 1  ;;  %v1643_v9 = vld [vmem:[%s1997_s5 + $0x30] sm:$0xff]   ;;  %v1650_v17 = vld [vmem:[%s1999_s7 + $0x38] sm:$0xff]   ;;  %v1652_v19 = vld [vmem:[%s1999_s7 + $0x28] sm:$0xff]  }
 0x131   : > { %v912_v58 = vsel %vm900_vm3, %v851_v52, %v911_v47  ;;  %v823_v62 = vadd.f32 %v822_v51, %v821_v39  ;;  %1565 = vmatpush3.bf16.msra.mxu0 %v1650_v17  ;;  %v1651_v18 = vld [vmem:[%s1999_s7 + $0x30] sm:$0xff]   ;;  %v1656_v33 = vld [vmem:[%s1999_s7 + $0x8] sm:$0xff]  }
 0x132   : > { %v857_v34 = vrot.slane %v856_v27, 1  ;;  %v867_v35 = vrot.slane %v866_v28, 4  ;;  %v875_v40 = vadd.f32 %v874_v31, %v873_v23  ;;  %v865_v63 = vadd.f32 %v864_v53, %v863_v38  ;;  %1566 = vmatprep.subr.bf16.mxu0 %v1690_v25  ;;  %v1654_v31 = vld [vmem:[%s1999_s7 + $0x18] sm:$0xff]   ;;  %v1413_v53 = vld [vmem:[%s2000_s8] ss:$0 sm:$0xff] }
 0x133   : > { %v909_v2 = vsel %vm908_vm7, %v823_v62, %v907_v60 }
 0x134   : > { %v868_v41 = vadd.f32 %v867_v35, %v866_v28  ;;  %v876_v44 = vrot.slane %v875_v40, 2  ;;  %v858_v49 = vadd.f32 %v857_v34, %v856_v27  ;;  %v1898_v6 = vmul.f32 0.0625, %v909_v2  ;;  %v1657_v34 = vld [vmem:[%s1999_s7] sm:$0xff]  }
 0x135   : > { %1567 = vmatpush3.bf16.msra.mxu0 %v1651_v18  ;;  %v1402_v35 = vld [vmem:[%s1998_s6] ss:$0 sm:$0xff] }
 0x136   : > { %v869_v50 = vrot.slane %v868_v41, 2  ;;  %v877_v54 = vadd.f32 %v876_v44, %v875_v40  ;;  %v913_v61 = vsel %vm902_vm4, %v858_v49, %v912_v58  ;;  %1568 = vmatprep.subr.bf16.mxu0 %v1690_v25 }
 0x137   : > { %v914_v3 = vsel %vm904_vm5, %v865_v63, %v913_v61 }
 0x138   : > { %v870_v55 = vadd.f32 %v869_v50, %v868_v41  ;;  %v878_v56 = vrot.slane %v877_v54, 1 }
 0x139   : > { %1569 = vmatpush3.bf16.msra.mxu0 %v1652_v19 }
 0x13a   : > { %v871_v59 = vrot.slane %v870_v55, 1  ;;  %v879_v1 = vadd.f32 %v878_v56, %v877_v54  ;;  %1570 = vmatprep.subr.bf16.mxu0 %v1690_v25 }
 0x13c   : > { %v872_v0 = vadd.f32 %v871_v59, %v870_v55 }
 0x13d   : > { %1571 = vmatpush3.bf16.msra.mxu0 %v1653_v30 }
 0x13e   : > { %v915_v4 = vsel %vm906_vm6, %v872_v0, %v914_v3  ;;  %1572 = vmatprep.subr.bf16.mxu0 %v1690_v25 }
 0x13f   : > { %v916_v5 = vsel %vm908_vm7, %v879_v1, %v915_v4 }
 0x140   : > { %v1900_v7 = vmul.f32 0.0625, %v916_v5 }
 0x141   : > { %1573 = vmatpush3.bf16.msra.mxu0 %v1654_v31 }
 0x142   : > { %v930_v57 = vpack.c.bf16 %v1900_v7, %v1898_v6  ;;  %1574 = vmatprep.subr.bf16.mxu0 %v1690_v25 }
 0x144   : > { %1541 = vmatmul.mubr.bf16.vlgmr.msra.gmra.mxu1 %v930_v57 }
 0x145   : > { %1545 = vmatpush3.bf16.msra.mxu1 %v1642_v8  ;;  %1560 = vmatprep.mubr.msk.bf16.mxu1 %vm1691_vm0, %v1690_v25 }
 0x146   : > { %1546 = vmatprep.subr.bf16.mxu1 %v1690_v25  ;;  %1575 = vmatpush3.bf16.msra.mxu0 %v1655_v32 }
 0x147   : > { %1576 = vmatprep.subr.bf16.mxu0 %v1690_v25 }
 0x149   : > { %1547 = vmatpush3.bf16.msra.mxu1 %v1643_v9 }
 0x14a   : > { %1548 = vmatprep.subr.bf16.mxu1 %v1690_v25  ;;  %1577 = vmatpush3.bf16.msra.mxu0 %v1656_v33 }
 0x14b   : > { %1578 = vmatprep.subr.bf16.mxu0 %v1690_v25 }
 0x14d   : > { %1549 = vmatpush3.bf16.msra.mxu1 %v1644_v10 }
 0x14e   : > { %1550 = vmatprep.subr.bf16.mxu1 %v1690_v25  ;;  %1579 = vmatpush3.bf16.msra.mxu0 %v1657_v34 }
 0x151   : > { %1551 = vmatpush3.bf16.msra.mxu1 %v1645_v11 }
 0x152   : > { %1552 = vmatprep.subr.bf16.mxu1 %v1690_v25 }
 0x155   : > { %1553 = vmatpush3.bf16.msra.mxu1 %v1646_v12 }
 0x156   : > { %1554 = vmatprep.subr.bf16.mxu1 %v1690_v25 }
 0x159   : > { %1555 = vmatpush3.bf16.msra.mxu1 %v1647_v13 }
 0x15a   : > { %1556 = vmatprep.subr.bf16.mxu1 %v1690_v25 }
 0x15d   : > { %1557 = vmatpush3.bf16.msra.mxu1 %v1648_v14 }
 0x15e   : > { %1558 = vmatprep.subr.bf16.mxu1 %v1690_v25 }
 0x161   : > { %1559 = vmatpush3.bf16.msra.mxu1 %v1649_v15 }
 0x204   : > { %v1036_v21 = vpop.f32.mrf.mxu1 }
 0x205   : > { %v1037_v23 = vadd.f32 %v1393_v20, %v1036_v21 }
 0x206   : > { %v1542_v22 = vpop.f32.mrf.mxu1 }
 0x207   : > { %v1043_v28 = vmax.f32 %v1037_v23, 0.0 }
 0x208   : > { %v1039_v24 = vpop.f32.mrf.mxu1 }
 0x209   : > { %v1040_v26 = vadd.f32 %v1393_v20, %v1039_v24 }
 0x20a   : > { %v1543_v27 = vpop.f32.mrf.mxu1 }
 0x20b   : > { %v1044_v29 = vmax.f32 %v1040_v26, 0.0 }
 0x20d   : > { %v1045_v39 = vpack.c.bf16 %v1044_v29, %v1043_v28 }
 0x20f   : > { %1561 = vmatmul.mubr.bf16.vlgmr.msra.gmra.mxu1 %v1045_v39 }
 0x2cf   : > { %v1151_v36 = vpop.f32.mrf.mxu1 }
 0x2d0   : > { %v1152_v37 = vadd.f32 %v1402_v35, %v1151_v36 }
 0x2d1   : > { %v1562_v38 = vpop.f32.mrf.mxu1 }
 0x2d2   : > { %v1411_v40 = vmul.f32 -1.442695, %v1152_v37 }
 0x2d3   : > { %v1154_v41 = vpop.f32.mrf.mxu1 }
 0x2d4   : > { %1658 = vpow2.f32 %v1411_v40  ;;  %v1155_v42 = vadd.f32 %v1402_v35, %v1154_v41 }
 0x2d5   : > { %v1563_v16 = vpop.f32.mrf.mxu1 }
 0x2d6   : > { %v1412_v43 = vmul.f32 -1.442695, %v1155_v42 }
 0x2d8   : > { %1660 = vpow2.f32 %v1412_v43 }
 0x2e1   : > { %v1659_v44 = vpop.eup %1658 }
 0x2e2   : > { %v1164_v45 = vadd.f32 1.0, %v1659_v44 }
 0x2e4   : > { %1662 = vrcp.f32 %v1164_v45 }
 0x2e5   : > { %v1661_v46 = vpop.eup %1660 }
 0x2e6   : > { %v1165_v25 = vadd.f32 1.0, %v1661_v46 }
 0x2e8   : > { %1664 = vrcp.f32 %v1165_v25 }
 0x2f1   : > { %v1663_v47 = vpop.eup %1662 }
 0x2f2   : > { %v1170_v50 = vmul.f32 %v1663_v47, %v1898_v6 }
 0x2f5   : > { %v1665_v49 = vpop.eup %1664 }
 0x2f6   : > { %v1171_v51 = vmul.f32 %v1665_v49, %v1900_v7 }
 0x2f8   : > { %v1172_v52 = vpack.c.bf16 %v1171_v51, %v1170_v50 }
 0x2fa   : > { %1581 = vmatmul.mubr.bf16.vlgmr.msra.gmra.mxu0 %v1172_v52 }
 0x3ba   : > { %v1278_v54 = vpop.f32.mrf.mxu0 }
 0x3bb   : > { %v1279_v55 = vadd.f32 %v1413_v53, %v1278_v54 }
 0x3bc   : > { %v1582_v56 = vpop.f32.mrf.mxu0 }
 0x3bd   : > { %1285 = vst [vmem:[%s365_s26] sm:$0xff] %v1279_v55 }
 0x3be   : > { %v1281_v48 = vpop.f32.mrf.mxu0 }
 0x3bf   : > { %v1282_v58 = vadd.f32 %v1413_v53, %v1281_v48 }
 0x3c0   : > { %v1583_v59 = vpop.f32.mrf.mxu0 }
 0x3c1   : > { %1286 = vst [vmem:[%s365_s26 + $0x8] sm:$0xff] %v1282_v58 }
 0x3c2 PF: > { %s19_s11 = sadd.s32 1, %s1688_s11   ;;  %s2002_s30 = smov %s1684_s10 }
 0x3c3   : > { %p16_p6 = scmp.ge.s32.totalorder %s19_s11, 4   ;;  %s2003_s10 = smov %s2005_s12 }
 0x3c5   :  { %18 = sbr.rel (!%p16_p6) target bundleno = 2 (0x2), region = 94 }

</bundles_post_ra>
